<compile_context>
chip_gen: v5e
topology: v5e:2x2
jax: 0.10.0
libtpu: 0.0.40
codegen_flags: <defaults>
</compile_context>

<pallas_src>
import jax
import jax.numpy as jnp
from jax.experimental import pallas as pl
from jax.experimental.pallas import tpu as pltpu


def _round_up(x, m):
    return ((x + m - 1) // m) * m


def cond_embedding_kernel(t_ref, ew1_ref, b1_ref, w2_ref, b2_ref, out_ref):
    """One batch tile: one-hot gather of folded Embedding@W1, bias, Swish, Linear2."""
    bt = out_ref.shape[0]
    v_pad = ew1_ref.shape[0]

    idx = t_ref[...]  # (bt, 1) int32

    # Vectorized "gather": one-hot (bt, V_pad) built on the VPU, contracted on
    # the MXU against the resident EW1 = emb_table @ w1 table.
    lane_ids = jax.lax.broadcasted_iota(jnp.int32, (bt, v_pad), 1)
    onehot = (lane_ids == idx).astype(jnp.float32)
    h = jnp.dot(onehot, ew1_ref[...], preferred_element_type=jnp.float32)

    # Linear1 bias + Swish
    h = h + b1_ref[...]
    h = h * jax.nn.sigmoid(h)

    # Linear2 (output columns zero-padded to lane-dense width in the wrapper)
    out = jnp.dot(h, w2_ref[...], preferred_element_type=jnp.float32) + b2_ref[...]
    out_ref[...] = out.astype(out_ref.dtype)


def conditional_embedding(t, emb_table, w1, b1, w2, b2, *, block_b=512):
    """t: (B,) int labels in [0, num_labels]; returns (B, dim) float32."""
    B = int(t.shape[0])
    V, _ = emb_table.shape
    dim = int(w2.shape[1])
    f32 = jnp.float32

    # Exact algebraic fold of Embedding @ W1 (one XLA dot per call):
    # (onehot @ E) @ W1 == onehot @ (E @ W1).
    ew1 = jnp.dot(emb_table.astype(f32), w1.astype(f32),
                  preferred_element_type=f32)                       # (V, dim)

    # Pad vocab rows to a multiple of 8 sublanes (zero rows are never selected).
    V_pad = _round_up(V, 8)
    if V_pad != V:
        ew1 = jnp.pad(ew1, ((0, V_pad - V), (0, 0)))

    # Lane-dense output: pad Linear2's output columns / b2 to a multiple of 128.
    dim_p = _round_up(dim, 128)
    w2p = w2.astype(f32)
    b2p = b2.astype(f32).reshape(1, dim)
    if dim_p != dim:
        w2p = jnp.pad(w2p, ((0, 0), (0, dim_p - dim)))
        b2p = jnp.pad(b2p, ((0, 0), (0, dim_p - dim)))
    b1p = b1.astype(f32).reshape(1, dim)

    # Batch tile: multiple of 8 sublanes, capped at block_b, and sized so the
    # grid has >= 2 tiles when B is large enough (v7x has 2 TensorCores).
    bt = min(block_b, max(8, _round_up(-(-B // 2), 8)))
    n_tiles = -(-B // bt)
    B_pad = n_tiles * bt

    # Pad labels with 0 (the padding row); padded output rows are sliced off.
    t_col = jnp.zeros((B_pad, 1), jnp.int32).at[:B, 0].set(t.astype(jnp.int32))

    out = pl.pallas_call(
        cond_embedding_kernel,
        out_shape=jax.ShapeDtypeStruct((B_pad, dim_p), f32),
        grid=(n_tiles,),
        in_specs=[
            pl.BlockSpec((bt, 1), lambda i: (i, 0)),         # labels (per tile)
            pl.BlockSpec((V_pad, dim), lambda i: (0, 0)),    # EW1   (resident)
            pl.BlockSpec((1, dim), lambda i: (0, 0)),        # b1    (resident)
            pl.BlockSpec((dim, dim_p), lambda i: (0, 0)),    # w2    (resident, padded cols)
            pl.BlockSpec((1, dim_p), lambda i: (0, 0)),      # b2    (resident, padded)
        ],
        out_specs=pl.BlockSpec((bt, dim_p), lambda i: (i, 0)),
        compiler_params=pltpu.CompilerParams(
            # batch tiles are independent -> shard across TCs on v7x
            dimension_semantics=("parallel",)),
    )(t_col, ew1, b1p, w2p, b2p)

    return out[:B, :dim]


def init_params(key, num_labels, d_model, dim):
    k_emb, k_w1, k_b1, k_w2, k_b2 = jax.random.split(key, 5)
    V = num_labels + 1
    emb_table = jax.random.normal(k_emb, (V, d_model), jnp.float32)
    # nn.Embedding(padding_idx=0) zeroes row 0 at init.
    emb_table = emb_table.at[0].set(0.0)
    # Linear weights stored as (in, out); deterministic synthetic init.
    w1 = jax.random.normal(k_w1, (d_model, dim), jnp.float32) / jnp.sqrt(d_model)
    b1 = jax.random.normal(k_b1, (1, dim), jnp.float32) * 0.01
    w2 = jax.random.normal(k_w2, (dim, dim), jnp.float32) / jnp.sqrt(dim)
    b2 = jax.random.normal(k_b2, (1, dim), jnp.float32) * 0.01
    return emb_table, w1, b1, w2, b2


def reference(t, emb_table, w1, b1, w2, b2):
    emb = jnp.take(emb_table, t.astype(jnp.int32), axis=0)
    h = emb @ w1 + b1
    h = h * jax.nn.sigmoid(h)
    return h @ w2 + b2


if __name__ == "__main__":
    num_labels, d_model, dim, batch = 10, 32, 64, 8

    key = jax.random.PRNGKey(0)
    k_params, k_t = jax.random.split(key)
    params = init_params(k_params, num_labels, d_model, dim)
    # labels in [0, num_labels]; 0 acts as the padding index (zero embedding row)
    t = jax.random.randint(k_t, (batch,), 0, num_labels + 1, dtype=jnp.int32)

    out = conditional_embedding(t, *params)
    out = jax.block_until_ready(out)

    ref = reference(t, *params)
    assert out.shape == (batch, dim)
    assert jnp.allclose(out, ref, atol=1e-5, rtol=1e-5), "mismatch vs reference"

    print("KERNEL_OK")
</pallas_src>

<mosaic_0001>
module attributes {stable_mosaic.version = 11 : i64} {
  func.func @cond_embedding_kernel(%arg0: i32, %arg1: memref<8x1xi32, #tpu.memory_space<vmem>>, %arg2: memref<16x64xf32, #tpu.memory_space<vmem>>, %arg3: memref<1x64xf32, #tpu.memory_space<vmem>>, %arg4: memref<64x128xf32, #tpu.memory_space<vmem>>, %arg5: memref<1x128xf32, #tpu.memory_space<vmem>>, %arg6: memref<8x128xf32, #tpu.memory_space<vmem>>) attributes {dimension_semantics = [#tpu.dimension_semantics<parallel>], iteration_bounds = array<i64: 1>, scalar_prefetch = 0 : i64, scratch_operands = 0 : i64, tpu.core_type = #tpu.core_type<tc>, window_params = [{transform_indices = @transform_0, window_bounds = array<i64: 8, 1>}, {pipeline_mode = #tpu.pipeline_mode<synchronous>, transform_indices = @transform_1, window_bounds = array<i64: 16, 64>}, {pipeline_mode = #tpu.pipeline_mode<synchronous>, transform_indices = @transform_2, window_bounds = array<i64: 1, 64>}, {pipeline_mode = #tpu.pipeline_mode<synchronous>, transform_indices = @transform_3, window_bounds = array<i64: 64, 128>}, {pipeline_mode = #tpu.pipeline_mode<synchronous>, transform_indices = @transform_4, window_bounds = array<i64: 1, 128>}, {transform_indices = @transform_5, window_bounds = array<i64: 8, 128>}]} {
    %c0 = arith.constant 0 : index
    %c0_0 = arith.constant 0 : index
    %0 = vector.load %arg1[%c0, %c0_0] : memref<8x1xi32, #tpu.memory_space<vmem>>, vector<8x1xi32>
    %1 = tpu.iota {dimensions = array<i32: 1>} : vector<8x16xi32>
    %2 = vector.broadcast %0 : vector<8x1xi32> to vector<8x16xi32>
    %3 = arith.cmpi eq, %1, %2 : vector<8x16xi32>
    %4 = arith.extui %3 : vector<8x16xi1> to vector<8x16xi32>
    %5 = arith.sitofp %4 : vector<8x16xi32> to vector<8x16xf32>
    %c0_1 = arith.constant 0 : index
    %c0_2 = arith.constant 0 : index
    %6 = vector.load %arg2[%c0_1, %c0_2] : memref<16x64xf32, #tpu.memory_space<vmem>>, vector<16x64xf32>
    %cst = arith.constant dense<0.000000e+00> : vector<8x64xf32>
    %7 = tpu.matmul %5, %6, %cst {dimension_numbers = #tpu.dot_dimension_numbers<[1], [0], [0], [1], [0, 0, 1, 1], [], []>} : vector<8x16xf32>, vector<16x64xf32>, vector<8x64xf32> -> vector<8x64xf32>
    %c0_3 = arith.constant 0 : index
    %c0_4 = arith.constant 0 : index
    %8 = vector.load %arg3[%c0_3, %c0_4] : memref<1x64xf32, #tpu.memory_space<vmem>>, vector<1x64xf32>
    %9 = vector.broadcast %8 : vector<1x64xf32> to vector<8x64xf32>
    %10 = arith.addf %7, %9 : vector<8x64xf32>
    %11 = arith.negf %10 : vector<8x64xf32>
    %12 = math.exp %11 : vector<8x64xf32>
    %cst_5 = arith.constant 1.000000e+00 : f32
    %13 = vector.broadcast %cst_5 : f32 to vector<8x64xf32>
    %14 = arith.addf %13, %12 : vector<8x64xf32>
    %15 = arith.divf %13, %14 : vector<8x64xf32>
    %16 = arith.mulf %10, %15 : vector<8x64xf32>
    %c0_6 = arith.constant 0 : index
    %c0_7 = arith.constant 0 : index
    %17 = vector.load %arg4[%c0_6, %c0_7] : memref<64x128xf32, #tpu.memory_space<vmem>>, vector<64x128xf32>
    %cst_8 = arith.constant dense<0.000000e+00> : vector<8x128xf32>
    %18 = tpu.matmul %16, %17, %cst_8 {dimension_numbers = #tpu.dot_dimension_numbers<[1], [0], [0], [1], [0, 0, 1, 1], [], []>} : vector<8x64xf32>, vector<64x128xf32>, vector<8x128xf32> -> vector<8x128xf32>
    %c0_9 = arith.constant 0 : index
    %c0_10 = arith.constant 0 : index
    %19 = vector.load %arg5[%c0_9, %c0_10] : memref<1x128xf32, #tpu.memory_space<vmem>>, vector<1x128xf32>
    %20 = vector.broadcast %19 : vector<1x128xf32> to vector<8x128xf32>
    %21 = arith.addf %18, %20 : vector<8x128xf32>
    %c0_11 = arith.constant 0 : index
    %c0_12 = arith.constant 0 : index
    %22 = vector.load %arg6[%c0_11, %c0_12] : memref<8x128xf32, #tpu.memory_space<vmem>>, vector<8x128xf32>
    tpu.vector_store %arg6[%c0_11, %c0_12], %21 {strides = array<i32>} : memref<8x128xf32, #tpu.memory_space<vmem>>, vector<8x128xf32>,
    return
  }
  func.func @transform_0(%arg0: i32) -> (i32, i32) {
    %c0_i32 = arith.constant 0 : i32
    %c0_i32_0 = arith.constant 0 : i32
    return %arg0, %c0_i32 : i32, i32
  }
  func.func @transform_1(%arg0: i32) -> (i32, i32) {
    %c0_i32 = arith.constant 0 : i32
    %c0_i32_0 = arith.constant 0 : i32
    %c0_i32_1 = arith.constant 0 : i32
    return %c0_i32, %c0_i32_0 : i32, i32
  }
  func.func @transform_2(%arg0: i32) -> (i32, i32) {
    %c0_i32 = arith.constant 0 : i32
    %c0_i32_0 = arith.constant 0 : i32
    %c0_i32_1 = arith.constant 0 : i32
    return %c0_i32, %c0_i32_0 : i32, i32
  }
  func.func @transform_3(%arg0: i32) -> (i32, i32) {
    %c0_i32 = arith.constant 0 : i32
    %c0_i32_0 = arith.constant 0 : i32
    %c0_i32_1 = arith.constant 0 : i32
    return %c0_i32, %c0_i32_0 : i32, i32
  }
  func.func @transform_4(%arg0: i32) -> (i32, i32) {
    %c0_i32 = arith.constant 0 : i32
    %c0_i32_0 = arith.constant 0 : i32
    %c0_i32_1 = arith.constant 0 : i32
    return %c0_i32, %c0_i32_0 : i32, i32
  }
  func.func @transform_5(%arg0: i32) -> (i32, i32) {
    %c0_i32 = arith.constant 0 : i32
    %c0_i32_0 = arith.constant 0 : i32
    return %arg0, %c0_i32 : i32, i32
  }
}

</mosaic_0001>

<bundles_post_ra>
// kernel: tpu_custom_call.1
= control target key start
LH: loop header
LB: loop body
LE: loop exit
PB: predicated region body
PF: predicated region fallthrough
CT: control target
= control target key end

     0   :  { %10 = vsyncpa [#allocation3], 0  ;;  %s318_s0 = inlined_call_operand.vmem [shape: s32[8,1], index: 0, kind: input, shape index: {}]   ;;  %s319_s1 = inlined_call_operand.hbm [shape: f32[16,64], index: 1, kind: input, shape index: {}]   ;;  %s320_s2 = inlined_call_operand.vmem [shape: f32[1,64], index: 2, kind: input, shape index: {}]   ;;  %s321_s3 = inlined_call_operand.hbm [shape: f32[64,128], index: 3, kind: input, shape index: {}]   ;;  %s322_s4 = inlined_call_operand.vmem [shape: f32[1,128], index: 4, kind: input, shape index: {}]   ;;  %s323_s5 = inlined_call_operand.hbm [shape: f32[8,128], index: 5, kind: output, shape index: {}]  }
   0x1   :  { %11 = vsyncpa [#allocation6], 0 }
   0x2   :  { %12 = vsyncpa [#allocation4], 0  ;;  %s19_s20 = sshll.u32 %s319_s1, 4  ;;  %s263_s21 = smov [#allocation2]   ;;  %s20_s20 = int_to_ptr.hbm [resolvable:$true] %s19_s20 }
   0x3   :  { %s21_s22 = sshll.u32 %s263_s21, 4  ;;  %s34_s25 = sshll.u32 %s321_s3, 4  ;;  %s22_s22 = int_to_ptr.vmem [resolvable:$true] %s21_s22  ;;  %s35_s25 = int_to_ptr.hbm [resolvable:$true] %s34_s25 }
   0x4   :  { %s264_s26 = smov 128   ;;  %s265_s27 = smov 8  }
   0x5   :  { %27 = dma.hbm_to_vmem [thread:$0]  %s20_s20, 256, %s22_s22, [#allocation3], %s264_s26, %s264_s26, %s265_s27  }
   0x6   :  { %s266_s28 = smov [#allocation5]  }
   0x7   :  { %s36_s29 = sshll.u32 %s266_s28, 4  ;;  %s37_s29 = int_to_ptr.vmem [resolvable:$true] %s36_s29 }
   0x8   :  { %42 = dma.hbm_to_vmem [thread:$0]  %s35_s25, 1024, %s37_s29, [#allocation6], %s264_s26, %s264_s26, %s265_s27  }
   0x9   :  { %257 = dma.done.wait [#allocation3], 256  }
   0xa   :  { %258 = vsyncadd [#allocation3], 4294967040 }
   0xb   :  { %259 = dma.done.wait [#allocation6], 1024  }
   0xc   :  { %260 = vsyncadd [#allocation6], 4294966272  ;;  %v267_v0 = vmov 0   ;;  %v53_v1 = vld [vmem:[%s318_s0] sm:$0xff]  ;;  %v63_v2 = vld [vmem:[#allocation2 + $0x8] sm:$0xff]  ;;  %v54_v4 = vlaneseq  ;;  %vm68_vm0 = vcmask 130048  }
   0xd   :  { %178 = vset.pattern.permute.xlu0 %v267_v0  ;;  %86 = vmatpush.msra.mxu0 %v63_v2  ;;  %v62_v3 = vld [vmem:[#allocation2] sm:$0xff]  ;;  %v268_v7 = vmov 0.0   ;;  %v119_v9 = vld [vmem:[#allocation5 + $0x38] sm:$0xff]  ;;  %v117_v11 = vld [vmem:[#allocation5 + $0x28] sm:$0xff]  ;;  %vm124_vm6 = vcmask 523264   ;;  %s269_s7 = smov [#allocation7]  }
   0xe   :  { %57 = vperm.xlu0 %178, %v53_v1   ;;  %v55_v5 = vand.u32 127, %v54_v4  ;;  %136 = vmatpush.msra.mxu1 %v119_v9  ;;  %v118_v10 = vld [vmem:[#allocation5 + $0x30] sm:$0xff]  ;;  %v116_v12 = vld [vmem:[#allocation5 + $0x20] sm:$0xff]  ;;  %v115_v13 = vld [vmem:[#allocation5 + $0x18] sm:$0xff]  ;;  %s154_s8 = sshll.u32 %s269_s7, 4  ;;  %s156_s11 = sshll.u32 %s323_s5, 4  ;;  %s155_s8 = int_to_ptr.vmem [resolvable:$true] %s154_s8  ;;  %s157_s11 = int_to_ptr.hbm [resolvable:$true] %s156_s11 }
   0xf   :  { %87 = vmatpush.msra.mxu0 %v62_v3  ;;  %v114_v14 = vld [vmem:[#allocation5 + $0x10] sm:$0xff]  ;;  %v113_v16 = vld [vmem:[#allocation5 + $0x8] sm:$0xff]  ;;  %v112_v17 = vld [vmem:[#allocation5] sm:$0xff] }
  0x10   :  { %137 = vmatpush.msra.mxu1 %v118_v10  ;;  %v179_v15 = vld [vmem:[%s320_s2] ss:$0 sm:$0xff] }
  0x11   :  { %v180_v34 = vld [vmem:[%s322_s4] ss:$0 sm:$0xff] }
  0x12   :  { %138 = vmatpush.msra.mxu1 %v117_v11 }
  0x14   :  { %139 = vmatpush.msra.mxu1 %v116_v12 }
  0x16   :  { %140 = vmatpush.msra.mxu1 %v115_v13 }
  0x18   :  { %141 = vmatpush.msra.mxu1 %v114_v14 }
  0x1a   :  { %142 = vmatpush.msra.mxu1 %v113_v16 }
  0x1c   :  { %143 = vmatpush.msra.mxu1 %v112_v17 }
  0x80   :  { %v58_v6 = vpop.permute.xlu0 %57 }
  0x81   :  { %vm59_vm1 = vcmp.eq.s32.totalorder %v55_v5, %v58_v6 }
  0x82   :  { %v167_v8 = vsel %vm59_vm1, 1.0, %v268_v7 }
  0x83   :  { %168 = vmatmul.msk.f32.vlgmr.msra.gmra.mxu0 %vm68_vm0, %v167_v8 }
 0x100   :  { %v89_v18 = vpop.f32.mrf.mxu0 }
 0x101   :  { %v90_v19 = vadd.f32 %v179_v15, %v89_v18 }
 0x103   :  { %v169_v20 = vmul.f32 -1.442695, %v90_v19 }
 0x105   :  { %181 = vpow2.f32 %v169_v20 }
 0x10b   :  { %v182_v21 = vpop.eup %181 }
 0x10c   :  { %v95_v22 = vadd.f32 1.0, %v182_v21 }
 0x10e   :  { %183 = vrcp.f32 %v95_v22  ;;  %v107_v26 = vand.u32 2147483648, %v95_v22  ;;  %v105_v28 = vand.u32 2147483647, %v95_v22  ;;  %vm101_vm3 = vweird.f32 %v95_v22 }
 0x110   :  { %v108_v30 = vor.u32 1.1754944e-38, %v107_v26  ;;  %vm106_vm5 = vcmp.eq.f32.partialorder %v105_v28, 8.507059e+37 }
 0x114   :  { %v184_v23 = vpop.eup %183 }
 0x115   :  { %v97_v24 = vmul.f32 %v184_v23, %v95_v22  ;;  %vm102_vm2 = vweird.f32 %v184_v23 }
 0x116   :  { %vm103_vm4 = vmor %vm101_vm3, %vm102_vm2 }
 0x117   :  { %v98_v25 = vsub.f32 1.0, %v97_v24 }
 0x119   :  { %v99_v27 = vmul.f32 %v184_v23, %v98_v25 }
 0x11b   :  { %v100_v29 = vadd.f32 %v184_v23, %v99_v27 }
 0x11d   :  { %v104_v31 = vsel %vm103_vm4, %v184_v23, %v100_v29 }
 0x11e   :  { %v109_v32 = vsel %vm106_vm5, %v108_v30, %v104_v31 }
 0x11f   :  { %v111_v33 = vmul.f32 %v109_v32, %v90_v19 }
 0x121   :  { %170 = vmatmul.msk.f32.vlgmr.msra.gmra.mxu1 %vm124_vm6, %v111_v33 }
 0x19e   :  { %v145_v35 = vpop.f32.mrf.mxu1 }
 0x19f   :  { %v146_v36 = vadd.f32 %v180_v34, %v145_v35 }
 0x1a1   :  { %148 = vst [vmem:[#allocation7] sm:$0xff] %v146_v36 }
 0x1a2   :  { %159 = dma.vmem_to_hbm [thread:$0]  %s155_s8, 128, %s157_s11, [#allocation4]  }
 0x1a3   :  { %261 = dma.done.wait [#allocation4], 128  }
 0x1a4   :  { %262 = vsyncadd [#allocation4], 4294967168 }
 0x1a5   :  { %164 = vsyncpa [#allocation3], 1 }
 0x1a6   :  { %165 = vsyncpa [#allocation6], 1 }
 0x1a7   :  { %166 = vsyncpa [#allocation4], 1 }

</bundles_post_ra>
